<compile_context>
chip_gen: v7x
topology: tpu7x:2x2x1
jax: 0.10.0
libtpu: 0.0.40
codegen_flags: <defaults>
</compile_context>

<pallas_src>
import functools

import numpy as np

import jax
import jax.numpy as jnp
from jax import lax
from jax.experimental import pallas as pl
from jax.experimental.pallas import tpu as pltpu


# ---------------------------------------------------------------------------
# Bilinear interpolation matrix (exact PyTorch align_corners=False weights,
# no antialiasing -- matches torch for up- AND down-scaling; matches
# jax.image.resize for upscaling).
# ---------------------------------------------------------------------------
def _linear_resize_weights_1d(n_in, n_out):
    if n_in == n_out:
        return np.eye(n_in, dtype=np.float32)
    out = np.arange(n_out, dtype=np.float64)
    src = (out + 0.5) * (n_in / n_out) - 0.5
    src = np.clip(src, 0.0, n_in - 1)
    lo = np.floor(src).astype(np.int64)
    hi = np.minimum(lo + 1, n_in - 1)
    w_hi = src - lo
    w_lo = 1.0 - w_hi
    m = np.zeros((n_in, n_out), dtype=np.float64)
    m[lo, np.arange(n_out)] += w_lo
    m[hi, np.arange(n_out)] += w_hi
    return m.astype(np.float32)


def _bilinear_interp_matrix(h_in, w_in, h_out, w_out):
    rh = _linear_resize_weights_1d(h_in, h_out)          # (H1, H2)
    rw = _linear_resize_weights_1d(w_in, w_out)          # (W1, W2)
    # M[h*W1+w, y*W2+x] = rh[h, y] * rw[w, x]  ->  up_flat = x_flat @ M
    return jnp.asarray(np.kron(rh, rw))                  # (H1*W1, H2*W2)


# ---------------------------------------------------------------------------
# Fused kernel: upsample(x1) + concat + 1x1 conv/BN/SiLU + 3x3 conv/BN/SiLU.
# Layout: channels on sublanes, flat spatial (H*W) on lanes; lane-dense stores.
# ---------------------------------------------------------------------------
def _fused_upconcat_conv_kernel(x1_ref, x2_ref, m_ref, w1a_ref, w1b_ref,
                                b1_ref, w2p_ref, b2_ref, o_ref, *,
                                H, W, bt, cm, use_strip, same_size):
    S = H * W
    mm_dtype = x2_ref.dtype        # matmul-operand dtype (f32 or bf16); accum f32

    # flat-spatial column index (shared by every image of this grid step)
    col = lax.broadcasted_iota(jnp.int32, (1, S), 1) % W
    not_first_col = col != 0
    not_last_col = col != (W - 1)

    w1a = w1a_ref[...]
    w1b = w1b_ref[...]
    b1 = b1_ref[...]
    w2p = w2p_ref[...]
    b2 = b2_ref[...]
    m_mat = None if same_size else m_ref[...]

    zcol = jnp.zeros((cm, 1), jnp.float32)
    zrow = jnp.zeros((cm, W), jnp.float32)

    for b in range(bt):                                   # static, bt is small
        # ---- fused bilinear upsample of x1 (one MXU matmul) ----------------
        if same_size:
            up1 = x1_ref[b]                               # (C1, S)
        else:
            up1 = jnp.dot(x1_ref[b], m_mat,
                          preferred_element_type=jnp.float32).astype(mm_dtype)

        # ---- stage 1: concat folded into the 1x1 conv (BN scale folded) ----
        t = jnp.dot(w1a, up1, preferred_element_type=jnp.float32)
        t = t + jnp.dot(w1b, x2_ref[b], preferred_element_type=jnp.float32)
        t = t + b1                                        # folded BN bias
        t = t * jax.nn.sigmoid(t)                         # SiLU, (Cm, S) f32

        # ---- stage 2: 3x3 conv (pad=1) + BN + SiLU -------------------------
        # Column shifts computed once; row shifts are +/-W lane slices with a
        # zero-row halo (vreg-aligned whenever W % 128 == 0).
        t_left = jnp.where(not_first_col,
                           jnp.concatenate([zcol, t[:, :S - 1]], axis=1), 0.0)
        t_right = jnp.where(not_last_col,
                            jnp.concatenate([t[:, 1:], zcol], axis=1), 0.0)
        variants = (t_left, t, t_right)                   # kx = 0, 1, 2

        def tap(ky, kx):                 # value at (i+ky-1, j+kx-1), zero halo
            v = variants[kx]
            if ky == 0:                  # row above
                return jnp.concatenate([zrow, v[:, :S - W]], axis=1)
            if ky == 2:                  # row below
                return jnp.concatenate([v[:, W:], zrow], axis=1)
            return v

        if use_strip:
            # small Cm: one fat-K matmul, K = 9*Cm
            strip = jnp.concatenate(
                [tap(ky, kx) for ky in range(3) for kx in range(3)], axis=0)
            y = jnp.dot(w2p, strip.astype(mm_dtype),
                        preferred_element_type=jnp.float32)
        else:
            # Cm >= 128: accumulate 9 matmuls, never materialize the 9x strip
            y = jnp.zeros((w2p.shape[0], S), jnp.float32)
            for ky in range(3):
                for kx in range(3):
                    k = ky * 3 + kx
                    y = y + jnp.dot(w2p[:, k * cm:(k + 1) * cm],
                                    tap(ky, kx).astype(mm_dtype),
                                    preferred_element_type=jnp.float32)

        y = y + b2
        y = y * jax.nn.sigmoid(y)                         # SiLU
        o_ref[b] = y.astype(o_ref.dtype)                  # lane-dense store


def _vmem_limit_bytes(bt, c1, c2, cout, s1, s2, act_bytes, use_strip):
    blocks = bt * (c1 * s1 + c2 * s2 + cout * s2) * act_bytes          # in+out
    weights = (s1 * s2 + cout * (c1 + c2 + 9 * cout) + 2 * cout) * act_bytes
    # f32 on-chip temporaries for one image (t, shifted copies, strip-or-acc, up1)
    tmp = (cout * s2 * (1 + 3 + (9 if use_strip else 2)) + c1 * s2) * 4
    est = 2 * blocks + weights + tmp                       # double-buffered I/O
    return int(min(64 * 2**20, max(32 * 2**20, 2 * est)))


# ---------------------------------------------------------------------------
# Wrapper
# ---------------------------------------------------------------------------
def upsample_concat_conv(x1_nchw, x2_nchw, params, *, act_dtype=jnp.float32,
                         batch_tile=None, force_accumulate=False):
    N, C1, H1, W1 = x1_nchw.shape
    N2, C2, H2, W2 = x2_nchw.shape
    assert N == N2
    cout = params["w1a"].shape[0]
    S1, S2 = H1 * W1, H2 * W2
    same_size = (H1, W1) == (H2, W2)
    act_dtype = np.dtype(act_dtype)

    # batch tile: amortize per-grid-step overhead; keep N/bt steps for megacore
    if batch_tile is None:
        batch_tile = 2 if (N >= 2 and N % 2 == 0) else 1
    assert N % batch_tile == 0, (N, batch_tile)
    bt = batch_tile

    # Precomputed interpolation matrix (skipped when spatial sizes match).
    if same_size:
        m = jnp.zeros((1, 1), act_dtype)                  # placeholder (unread)
    else:
        m = _bilinear_interp_matrix(H1, W1, H2, W2).astype(act_dtype)

    # NCHW -> (N, C, H*W): free contiguous reshapes; lanes carry flat spatial.
    x1f = x1_nchw.reshape(N, C1, S1).astype(act_dtype)
    x2f = x2_nchw.reshape(N, C2, S2).astype(act_dtype)
    w1a = params["w1a"].astype(act_dtype)
    w1b = params["w1b"].astype(act_dtype)
    w2p = params["w2p"].astype(act_dtype)
    b1 = params["b1"].astype(jnp.float32)
    b2 = params["b2"].astype(jnp.float32)

    use_strip = (cout < 128) and not force_accumulate

    kernel = functools.partial(
        _fused_upconcat_conv_kernel, H=H2, W=W2, bt=bt, cm=cout,
        use_strip=use_strip, same_size=same_size)

    vmem_limit = _vmem_limit_bytes(bt, C1, C2, cout, S1, S2,
                                   act_dtype.itemsize, use_strip)

    out = pl.pallas_call(
        kernel,
        grid=(N // bt,),
        in_specs=[
            pl.BlockSpec((bt, C1, S1), lambda i: (i, 0, 0)),
            pl.BlockSpec((bt, C2, S2), lambda i: (i, 0, 0)),
            pl.BlockSpec(m.shape, lambda i: (0, 0)),
            pl.BlockSpec(w1a.shape, lambda i: (0, 0)),
            pl.BlockSpec(w1b.shape, lambda i: (0, 0)),
            pl.BlockSpec(b1.shape, lambda i: (0, 0)),
            pl.BlockSpec(w2p.shape, lambda i: (0, 0)),
            pl.BlockSpec(b2.shape, lambda i: (0, 0)),
        ],
        out_specs=pl.BlockSpec((bt, cout, S2), lambda i: (i, 0, 0)),
        out_shape=jax.ShapeDtypeStruct((N, cout, S2), act_dtype),
        compiler_params=pltpu.CompilerParams(
            dimension_semantics=("parallel",),
            vmem_limit_bytes=vmem_limit),
    )(x1f, x2f, m, w1a, w1b, b1, w2p, b2)

    # (N, Cout, H*W) -> NCHW, free reshape.
    return out.reshape(N, cout, H2, W2)


# ---------------------------------------------------------------------------
# Parameter construction (deterministic, synthetic), BN folding and packing
# ---------------------------------------------------------------------------
def _fold_bn(gamma, beta, mean, var, eps=1e-8):           # module uses eps=1e-08
    scale = gamma / jnp.sqrt(var + eps)
    bias = beta - mean * scale
    return scale, bias


def pack_params(raw, in1_dim):
    """Fold BN scale into conv weights; pack into kernel layouts."""
    w1, w2 = raw["w1"], raw["w2"]          # (Cout, Cin), (Cout, Cm, 3, 3) OIHW
    cout = w1.shape[0]
    w1s = w1 * raw["s1"][:, None]
    w2s = w2 * raw["s2"][:, None, None, None]
    w1a = w1s[:, :in1_dim]                 # applies to (upsampled) x1 channels
    w1b = w1s[:, in1_dim:]                 # applies to x2 channels
    # (Cout, Cm, ky, kx) -> (Cout, ky, kx, Cm) -> (Cout, 9*Cm);
    # column index (ky*3+kx)*Cm + ci matches the in-kernel tap order.
    w2p = jnp.transpose(w2s, (0, 2, 3, 1)).reshape(cout, -1)
    return {"w1a": w1a, "w1b": w1b, "b1": raw["b1"].reshape(cout, 1),
            "w2p": w2p, "b2": raw["b2"].reshape(cout, 1)}


def make_params(in1_dim, in2_dim, out_dim, key):
    cin = in1_dim + in2_dim
    ks = jax.random.split(key, 10)
    w1 = 0.2 * jax.random.normal(ks[0], (out_dim, cin), jnp.float32)
    w2 = 0.2 * jax.random.normal(ks[1], (out_dim, out_dim, 3, 3), jnp.float32)
    g1 = 1.0 + 0.1 * jax.random.normal(ks[2], (out_dim,), jnp.float32)
    be1 = 0.1 * jax.random.normal(ks[3], (out_dim,), jnp.float32)
    m1 = 0.1 * jax.random.normal(ks[4], (out_dim,), jnp.float32)
    v1 = jnp.abs(jax.random.normal(ks[5], (out_dim,), jnp.float32)) + 0.5
    g2 = 1.0 + 0.1 * jax.random.normal(ks[6], (out_dim,), jnp.float32)
    be2 = 0.1 * jax.random.normal(ks[7], (out_dim,), jnp.float32)
    m2 = 0.1 * jax.random.normal(ks[8], (out_dim,), jnp.float32)
    v2 = jnp.abs(jax.random.normal(ks[9], (out_dim,), jnp.float32)) + 0.5
    s1, b1 = _fold_bn(g1, be1, m1, v1)
    s2, b2 = _fold_bn(g2, be2, m2, v2)
    raw = {"w1": w1, "w2": w2, "s1": s1, "b1": b1, "s2": s2, "b2": b2}
    return pack_params(raw, in1_dim), raw


# ---------------------------------------------------------------------------
# Pure-JAX reference (unfolded BN, NCHW convolutions, jax.image.resize).
# jax.image.resize (bilinear) == torch F.interpolate(align_corners=False) for
# upsampling, so this independently validates the in-kernel interp matrix.
# ---------------------------------------------------------------------------
def reference(x1_nchw, x2_nchw, raw):
    N, C1, H1, W1 = x1_nchw.shape
    _, C2, H2, W2 = x2_nchw.shape
    if (H1, W1) != (H2, W2):
        x1_nchw = jax.image.resize(x1_nchw, (N, C1, H2, W2), method="bilinear")
    y = jnp.concatenate([x1_nchw, x2_nchw], axis=1)
    dn = ("NCHW", "OIHW", "NCHW")
    y = lax.conv_general_dilated(y, raw["w1"][:, :, None, None], (1, 1), "VALID",
                                 dimension_numbers=dn)
    y = y * raw["s1"][None, :, None, None] + raw["b1"][None, :, None, None]
    y = y * jax.nn.sigmoid(y)
    y = lax.conv_general_dilated(y, raw["w2"], (1, 1), "SAME",
                                 dimension_numbers=dn)
    y = y * raw["s2"][None, :, None, None] + raw["b2"][None, :, None, None]
    y = y * jax.nn.sigmoid(y)
    return y


if __name__ == "__main__":
    key = jax.random.PRNGKey(0)
    k1, k2, kp = jax.random.split(key, 3)

    in1_dim, in2_dim, out_dim = 4, 6, 8
    # x1 at lower resolution -> upsampled (in-kernel) to x2's spatial shape.
    x1 = jax.random.normal(k1, (2, in1_dim, 8, 8), jnp.float32)
    x2 = jax.random.normal(k2, (2, in2_dim, 16, 16), jnp.float32)
    params, raw = make_params(in1_dim, in2_dim, out_dim, kp)

    ref = jax.block_until_ready(reference(x1, x2, raw))

    # 1) f32, fat-K strip path (small Cm) -- tight check.
    fwd = jax.jit(functools.partial(upsample_concat_conv, params=params))
    out = jax.block_until_ready(fwd(x1, x2))
    assert out.shape == (2, out_dim, 16, 16), out.shape
    err = float(jnp.max(jnp.abs(out - ref)))
    assert err < 1e-4, err

    # 2) f32, per-tap accumulation path (the Cm>=128 production path, forced
    #    here for coverage) -- tight check.
    fwd_acc = jax.jit(functools.partial(upsample_concat_conv, params=params,
                                        force_accumulate=True))
    out_acc = jax.block_until_ready(fwd_acc(x1, x2))
    err_acc = float(jnp.max(jnp.abs(out_acc - ref)))
    assert err_acc < 1e-4, err_acc

    # 3) bf16 matmul operands / storage, f32 accumulation -- loose check.
    fwd_bf16 = jax.jit(functools.partial(upsample_concat_conv, params=params,
                                         act_dtype=jnp.bfloat16))
    out_bf16 = jax.block_until_ready(fwd_bf16(x1, x2)).astype(jnp.float32)
    err_bf16 = float(jnp.max(jnp.abs(out_bf16 - ref)))
    assert err_bf16 < 1.5e-1, err_bf16

    print("KERNEL_OK")
</pallas_src>

<mosaic_0001>
module attributes {stable_mosaic.version = 11 : i64} {
  func.func @_fused_upconcat_conv_kernel(%arg0: i32, %arg1: memref<2x4x64xf32, #tpu.memory_space<vmem>>, %arg2: memref<2x6x256xf32, #tpu.memory_space<vmem>>, %arg3: memref<64x256xf32, #tpu.memory_space<vmem>>, %arg4: memref<8x4xf32, #tpu.memory_space<vmem>>, %arg5: memref<8x6xf32, #tpu.memory_space<vmem>>, %arg6: memref<8x1xf32, #tpu.memory_space<vmem>>, %arg7: memref<8x72xf32, #tpu.memory_space<vmem>>, %arg8: memref<8x1xf32, #tpu.memory_space<vmem>>, %arg9: memref<2x8x256xf32, #tpu.memory_space<vmem>>) attributes {dimension_semantics = [#tpu.dimension_semantics<parallel>], iteration_bounds = array<i64: 1>, scalar_prefetch = 0 : i64, scratch_operands = 0 : i64, tpu.core_type = #tpu.core_type<tc>, window_params = [{transform_indices = @transform_0, window_bounds = array<i64: 2, 4, 64>}, {transform_indices = @transform_1, window_bounds = array<i64: 2, 6, 256>}, {pipeline_mode = #tpu.pipeline_mode<synchronous>, transform_indices = @transform_2, window_bounds = array<i64: 64, 256>}, {pipeline_mode = #tpu.pipeline_mode<synchronous>, transform_indices = @transform_3, window_bounds = array<i64: 8, 4>}, {pipeline_mode = #tpu.pipeline_mode<synchronous>, transform_indices = @transform_4, window_bounds = array<i64: 8, 6>}, {pipeline_mode = #tpu.pipeline_mode<synchronous>, transform_indices = @transform_5, window_bounds = array<i64: 8, 1>}, {pipeline_mode = #tpu.pipeline_mode<synchronous>, transform_indices = @transform_6, window_bounds = array<i64: 8, 72>}, {pipeline_mode = #tpu.pipeline_mode<synchronous>, transform_indices = @transform_7, window_bounds = array<i64: 8, 1>}, {transform_indices = @transform_8, window_bounds = array<i64: 2, 8, 256>}]} {
    %0 = tpu.iota {dimensions = array<i32: 1>} : vector<1x256xi32>
    %c16_i32 = arith.constant 16 : i32
    %c0_i32 = arith.constant 0 : i32
    %1 = arith.cmpi eq, %c16_i32, %c0_i32 : i32
    %c1_i32 = arith.constant 1 : i32
    %2 = arith.select %1, %c1_i32, %c16_i32 : i32
    %3 = vector.broadcast %2 : i32 to vector<1x256xi32>
    %4 = arith.remsi %0, %3 : vector<1x256xi32>
    %c0_i32_0 = arith.constant 0 : i32
    %5 = vector.broadcast %c0_i32_0 : i32 to vector<1x256xi32>
    %6 = arith.cmpi ne, %4, %5 : vector<1x256xi32>
    %c0_i32_1 = arith.constant 0 : i32
    %7 = vector.broadcast %c0_i32_1 : i32 to vector<1x256xi32>
    %8 = arith.cmpi slt, %4, %7 : vector<1x256xi32>
    %c0_i32_2 = arith.constant 0 : i32
    %9 = arith.cmpi slt, %2, %c0_i32_2 : i32
    %10 = vector.broadcast %9 : i1 to vector<1x256xi1>
    %11 = vector.broadcast %10 : vector<1x256xi1> to vector<1x256xi1>
    %12 = arith.xori %8, %11 : vector<1x256xi1>
    %13 = arith.andi %12, %6 : vector<1x256xi1>
    %14 = vector.broadcast %2 : i32 to vector<1x256xi32>
    %15 = arith.addi %4, %14 : vector<1x256xi32>
    %16 = arith.select %13, %15, %4 : vector<1x256xi1>, vector<1x256xi32>
    %c0_i32_3 = arith.constant 0 : i32
    %17 = vector.broadcast %c0_i32_3 : i32 to vector<1x256xi32>
    %18 = arith.cmpi ne, %16, %17 : vector<1x256xi32>
    %c15_i32 = arith.constant 15 : i32
    %19 = vector.broadcast %c15_i32 : i32 to vector<1x256xi32>
    %20 = arith.cmpi ne, %16, %19 : vector<1x256xi32>
    %c0 = arith.constant 0 : index
    %c0_4 = arith.constant 0 : index
    %21 = vector.load %arg4[%c0, %c0_4] : memref<8x4xf32, #tpu.memory_space<vmem>>, vector<8x4xf32>
    %c0_5 = arith.constant 0 : index
    %c0_6 = arith.constant 0 : index
    %22 = vector.load %arg5[%c0_5, %c0_6] : memref<8x6xf32, #tpu.memory_space<vmem>>, vector<8x6xf32>
    %c0_7 = arith.constant 0 : index
    %c0_8 = arith.constant 0 : index
    %23 = vector.load %arg6[%c0_7, %c0_8] : memref<8x1xf32, #tpu.memory_space<vmem>>, vector<8x1xf32>
    %c0_9 = arith.constant 0 : index
    %c0_10 = arith.constant 0 : index
    %24 = vector.load %arg7[%c0_9, %c0_10] : memref<8x72xf32, #tpu.memory_space<vmem>>, vector<8x72xf32>
    %c0_11 = arith.constant 0 : index
    %c0_12 = arith.constant 0 : index
    %25 = vector.load %arg8[%c0_11, %c0_12] : memref<8x1xf32, #tpu.memory_space<vmem>>, vector<8x1xf32>
    %c0_13 = arith.constant 0 : index
    %c0_14 = arith.constant 0 : index
    %26 = vector.load %arg3[%c0_13, %c0_14] : memref<64x256xf32, #tpu.memory_space<vmem>>, vector<64x256xf32>
    %cst = arith.constant 0.000000e+00 : f32
    %27 = vector.broadcast %cst : f32 to vector<8x1xf32>
    %cst_15 = arith.constant 0.000000e+00 : f32
    %28 = vector.broadcast %cst_15 : f32 to vector<8x16xf32>
    %c0_16 = arith.constant 0 : index
    %c0_17 = arith.constant 0 : index
    %c0_18 = arith.constant 0 : index
    %29 = vector.load %arg1[%c0_16, %c0_17, %c0_18] : memref<2x4x64xf32, #tpu.memory_space<vmem>>, vector<1x4x64xf32>
    %30 = vector.shape_cast %29 : vector<1x4x64xf32> to vector<4x64xf32>
    %cst_19 = arith.constant dense<0.000000e+00> : vector<4x256xf32>
    %31 = tpu.matmul %30, %26, %cst_19 {dimension_numbers = #tpu.dot_dimension_numbers<[1], [0], [0], [1], [0, 0, 1, 1], [], []>} : vector<4x64xf32>, vector<64x256xf32>, vector<4x256xf32> -> vector<4x256xf32>
    %cst_20 = arith.constant dense<0.000000e+00> : vector<8x256xf32>
    %32 = tpu.matmul %21, %31, %cst_20 {dimension_numbers = #tpu.dot_dimension_numbers<[1], [0], [0], [1], [0, 0, 1, 1], [], []>} : vector<8x4xf32>, vector<4x256xf32>, vector<8x256xf32> -> vector<8x256xf32>
    %c0_21 = arith.constant 0 : index
    %c0_22 = arith.constant 0 : index
    %c0_23 = arith.constant 0 : index
    %33 = vector.load %arg2[%c0_21, %c0_22, %c0_23] : memref<2x6x256xf32, #tpu.memory_space<vmem>>, vector<1x6x256xf32>
    %34 = vector.shape_cast %33 : vector<1x6x256xf32> to vector<6x256xf32>
    %cst_24 = arith.constant dense<0.000000e+00> : vector<8x256xf32>
    %35 = tpu.matmul %22, %34, %cst_24 {dimension_numbers = #tpu.dot_dimension_numbers<[1], [0], [0], [1], [0, 0, 1, 1], [], []>} : vector<8x6xf32>, vector<6x256xf32>, vector<8x256xf32> -> vector<8x256xf32>
    %36 = arith.addf %32, %35 : vector<8x256xf32>
    %37 = vector.broadcast %23 : vector<8x1xf32> to vector<8x256xf32>
    %38 = arith.addf %36, %37 : vector<8x256xf32>
    %39 = arith.negf %38 : vector<8x256xf32>
    %40 = math.exp %39 : vector<8x256xf32>
    %cst_25 = arith.constant 1.000000e+00 : f32
    %41 = vector.broadcast %cst_25 : f32 to vector<8x256xf32>
    %42 = arith.addf %41, %40 : vector<8x256xf32>
    %43 = arith.divf %41, %42 : vector<8x256xf32>
    %44 = arith.mulf %38, %43 : vector<8x256xf32>
    %45 = vector.extract_strided_slice %44 {offsets = [0, 0], sizes = [8, 255], strides = [1, 1]} : vector<8x256xf32> to vector<8x255xf32>
    %46 = tpu.concatenate %27, %45 in 1 : vector<8x1xf32>, vector<8x255xf32> -> vector<8x256xf32>
    %cst_26 = arith.constant 0.000000e+00 : f32
    %47 = vector.shape_cast %18 : vector<1x256xi1> to vector<1x256xi1>
    %48 = vector.broadcast %47 : vector<1x256xi1> to vector<8x256xi1>
    %49 = vector.broadcast %cst_26 : f32 to vector<8x256xf32>
    %50 = arith.select %48, %46, %49 : vector<8x256xi1>, vector<8x256xf32>
    %51 = vector.extract_strided_slice %44 {offsets = [0, 1], sizes = [8, 255], strides = [1, 1]} : vector<8x256xf32> to vector<8x255xf32>
    %52 = tpu.concatenate %51, %27 in 1 : vector<8x255xf32>, vector<8x1xf32> -> vector<8x256xf32>
    %cst_27 = arith.constant 0.000000e+00 : f32
    %53 = vector.shape_cast %20 : vector<1x256xi1> to vector<1x256xi1>
    %54 = vector.broadcast %53 : vector<1x256xi1> to vector<8x256xi1>
    %55 = vector.broadcast %cst_27 : f32 to vector<8x256xf32>
    %56 = arith.select %54, %52, %55 : vector<8x256xi1>, vector<8x256xf32>
    %57 = vector.extract_strided_slice %50 {offsets = [0, 0], sizes = [8, 240], strides = [1, 1]} : vector<8x256xf32> to vector<8x240xf32>
    %58 = tpu.concatenate %28, %57 in 1 : vector<8x16xf32>, vector<8x240xf32> -> vector<8x256xf32>
    %59 = vector.extract_strided_slice %44 {offsets = [0, 0], sizes = [8, 240], strides = [1, 1]} : vector<8x256xf32> to vector<8x240xf32>
    %60 = tpu.concatenate %28, %59 in 1 : vector<8x16xf32>, vector<8x240xf32> -> vector<8x256xf32>
    %61 = vector.extract_strided_slice %56 {offsets = [0, 0], sizes = [8, 240], strides = [1, 1]} : vector<8x256xf32> to vector<8x240xf32>
    %62 = tpu.concatenate %28, %61 in 1 : vector<8x16xf32>, vector<8x240xf32> -> vector<8x256xf32>
    %63 = vector.extract_strided_slice %50 {offsets = [0, 16], sizes = [8, 240], strides = [1, 1]} : vector<8x256xf32> to vector<8x240xf32>
    %64 = tpu.concatenate %63, %28 in 1 : vector<8x240xf32>, vector<8x16xf32> -> vector<8x256xf32>
    %65 = vector.extract_strided_slice %44 {offsets = [0, 16], sizes = [8, 240], strides = [1, 1]} : vector<8x256xf32> to vector<8x240xf32>
    %66 = tpu.concatenate %65, %28 in 1 : vector<8x240xf32>, vector<8x16xf32> -> vector<8x256xf32>
    %67 = vector.extract_strided_slice %56 {offsets = [0, 16], sizes = [8, 240], strides = [1, 1]} : vector<8x256xf32> to vector<8x240xf32>
    %68 = tpu.concatenate %67, %28 in 1 : vector<8x240xf32>, vector<8x16xf32> -> vector<8x256xf32>
    %69 = tpu.concatenate %58, %60, %62, %50, %44, %56, %64, %66, %68 in 0 : vector<8x256xf32>, vector<8x256xf32>, vector<8x256xf32>, vector<8x256xf32>, vector<8x256xf32>, vector<8x256xf32>, vector<8x256xf32>, vector<8x256xf32>, vector<8x256xf32> -> vector<72x256xf32>
    %cst_28 = arith.constant dense<0.000000e+00> : vector<8x256xf32>
    %70 = tpu.matmul %24, %69, %cst_28 {dimension_numbers = #tpu.dot_dimension_numbers<[1], [0], [0], [1], [0, 0, 1, 1], [], []>} : vector<8x72xf32>, vector<72x256xf32>, vector<8x256xf32> -> vector<8x256xf32>
    %71 = vector.broadcast %25 : vector<8x1xf32> to vector<8x256xf32>
    %72 = arith.addf %70, %71 : vector<8x256xf32>
    %73 = arith.negf %72 : vector<8x256xf32>
    %74 = math.exp %73 : vector<8x256xf32>
    %cst_29 = arith.constant 1.000000e+00 : f32
    %75 = vector.broadcast %cst_29 : f32 to vector<8x256xf32>
    %76 = arith.addf %75, %74 : vector<8x256xf32>
    %77 = arith.divf %75, %76 : vector<8x256xf32>
    %78 = arith.mulf %72, %77 : vector<8x256xf32>
    %c0_30 = arith.constant 0 : index
    %c0_31 = arith.constant 0 : index
    %c0_32 = arith.constant 0 : index
    %79 = vector.load %arg9[%c0_30, %c0_31, %c0_32] : memref<2x8x256xf32, #tpu.memory_space<vmem>>, vector<1x8x256xf32>
    %80 = vector.shape_cast %79 : vector<1x8x256xf32> to vector<8x256xf32>
    %81 = vector.shape_cast %78 : vector<8x256xf32> to vector<1x8x256xf32>
    tpu.vector_store %arg9[%c0_30, %c0_31, %c0_32], %81 {strides = array<i32>} : memref<2x8x256xf32, #tpu.memory_space<vmem>>, vector<1x8x256xf32>,
    %c1 = arith.constant 1 : index
    %c0_33 = arith.constant 0 : index
    %c0_34 = arith.constant 0 : index
    %82 = vector.load %arg1[%c1, %c0_33, %c0_34] : memref<2x4x64xf32, #tpu.memory_space<vmem>>, vector<1x4x64xf32>
    %83 = vector.shape_cast %82 : vector<1x4x64xf32> to vector<4x64xf32>
    %cst_35 = arith.constant dense<0.000000e+00> : vector<4x256xf32>
    %84 = tpu.matmul %83, %26, %cst_35 {dimension_numbers = #tpu.dot_dimension_numbers<[1], [0], [0], [1], [0, 0, 1, 1], [], []>} : vector<4x64xf32>, vector<64x256xf32>, vector<4x256xf32> -> vector<4x256xf32>
    %cst_36 = arith.constant dense<0.000000e+00> : vector<8x256xf32>
    %85 = tpu.matmul %21, %84, %cst_36 {dimension_numbers = #tpu.dot_dimension_numbers<[1], [0], [0], [1], [0, 0, 1, 1], [], []>} : vector<8x4xf32>, vector<4x256xf32>, vector<8x256xf32> -> vector<8x256xf32>
    %c1_37 = arith.constant 1 : index
    %c0_38 = arith.constant 0 : index
    %c0_39 = arith.constant 0 : index
    %86 = vector.load %arg2[%c1_37, %c0_38, %c0_39] : memref<2x6x256xf32, #tpu.memory_space<vmem>>, vector<1x6x256xf32>
    %87 = vector.shape_cast %86 : vector<1x6x256xf32> to vector<6x256xf32>
    %cst_40 = arith.constant dense<0.000000e+00> : vector<8x256xf32>
    %88 = tpu.matmul %22, %87, %cst_40 {dimension_numbers = #tpu.dot_dimension_numbers<[1], [0], [0], [1], [0, 0, 1, 1], [], []>} : vector<8x6xf32>, vector<6x256xf32>, vector<8x256xf32> -> vector<8x256xf32>
    %89 = arith.addf %85, %88 : vector<8x256xf32>
    %90 = vector.broadcast %23 : vector<8x1xf32> to vector<8x256xf32>
    %91 = arith.addf %89, %90 : vector<8x256xf32>
    %92 = arith.negf %91 : vector<8x256xf32>
    %93 = math.exp %92 : vector<8x256xf32>
    %cst_41 = arith.constant 1.000000e+00 : f32
    %94 = vector.broadcast %cst_41 : f32 to vector<8x256xf32>
    %95 = arith.addf %94, %93 : vector<8x256xf32>
    %96 = arith.divf %94, %95 : vector<8x256xf32>
    %97 = arith.mulf %91, %96 : vector<8x256xf32>
    %98 = vector.extract_strided_slice %97 {offsets = [0, 0], sizes = [8, 255], strides = [1, 1]} : vector<8x256xf32> to vector<8x255xf32>
    %99 = tpu.concatenate %27, %98 in 1 : vector<8x1xf32>, vector<8x255xf32> -> vector<8x256xf32>
    %cst_42 = arith.constant 0.000000e+00 : f32
    %100 = vector.shape_cast %18 : vector<1x256xi1> to vector<1x256xi1>
    %101 = vector.broadcast %100 : vector<1x256xi1> to vector<8x256xi1>
    %102 = vector.broadcast %cst_42 : f32 to vector<8x256xf32>
    %103 = arith.select %101, %99, %102 : vector<8x256xi1>, vector<8x256xf32>
    %104 = vector.extract_strided_slice %97 {offsets = [0, 1], sizes = [8, 255], strides = [1, 1]} : vector<8x256xf32> to vector<8x255xf32>
    %105 = tpu.concatenate %104, %27 in 1 : vector<8x255xf32>, vector<8x1xf32> -> vector<8x256xf32>
    %cst_43 = arith.constant 0.000000e+00 : f32
    %106 = vector.shape_cast %20 : vector<1x256xi1> to vector<1x256xi1>
    %107 = vector.broadcast %106 : vector<1x256xi1> to vector<8x256xi1>
    %108 = vector.broadcast %cst_43 : f32 to vector<8x256xf32>
    %109 = arith.select %107, %105, %108 : vector<8x256xi1>, vector<8x256xf32>
    %110 = vector.extract_strided_slice %103 {offsets = [0, 0], sizes = [8, 240], strides = [1, 1]} : vector<8x256xf32> to vector<8x240xf32>
    %111 = tpu.concatenate %28, %110 in 1 : vector<8x16xf32>, vector<8x240xf32> -> vector<8x256xf32>
    %112 = vector.extract_strided_slice %97 {offsets = [0, 0], sizes = [8, 240], strides = [1, 1]} : vector<8x256xf32> to vector<8x240xf32>
    %113 = tpu.concatenate %28, %112 in 1 : vector<8x16xf32>, vector<8x240xf32> -> vector<8x256xf32>
    %114 = vector.extract_strided_slice %109 {offsets = [0, 0], sizes = [8, 240], strides = [1, 1]} : vector<8x256xf32> to vector<8x240xf32>
    %115 = tpu.concatenate %28, %114 in 1 : vector<8x16xf32>, vector<8x240xf32> -> vector<8x256xf32>
    %116 = vector.extract_strided_slice %103 {offsets = [0, 16], sizes = [8, 240], strides = [1, 1]} : vector<8x256xf32> to vector<8x240xf32>
    %117 = tpu.concatenate %116, %28 in 1 : vector<8x240xf32>, vector<8x16xf32> -> vector<8x256xf32>
    %118 = vector.extract_strided_slice %97 {offsets = [0, 16], sizes = [8, 240], strides = [1, 1]} : vector<8x256xf32> to vector<8x240xf32>
    %119 = tpu.concatenate %118, %28 in 1 : vector<8x240xf32>, vector<8x16xf32> -> vector<8x256xf32>
    %120 = vector.extract_strided_slice %109 {offsets = [0, 16], sizes = [8, 240], strides = [1, 1]} : vector<8x256xf32> to vector<8x240xf32>
    %121 = tpu.concatenate %120, %28 in 1 : vector<8x240xf32>, vector<8x16xf32> -> vector<8x256xf32>
    %122 = tpu.concatenate %111, %113, %115, %103, %97, %109, %117, %119, %121 in 0 : vector<8x256xf32>, vector<8x256xf32>, vector<8x256xf32>, vector<8x256xf32>, vector<8x256xf32>, vector<8x256xf32>, vector<8x256xf32>, vector<8x256xf32>, vector<8x256xf32> -> vector<72x256xf32>
    %cst_44 = arith.constant dense<0.000000e+00> : vector<8x256xf32>
    %123 = tpu.matmul %24, %122, %cst_44 {dimension_numbers = #tpu.dot_dimension_numbers<[1], [0], [0], [1], [0, 0, 1, 1], [], []>} : vector<8x72xf32>, vector<72x256xf32>, vector<8x256xf32> -> vector<8x256xf32>
    %124 = vector.broadcast %25 : vector<8x1xf32> to vector<8x256xf32>
    %125 = arith.addf %123, %124 : vector<8x256xf32>
    %126 = arith.negf %125 : vector<8x256xf32>
    %127 = math.exp %126 : vector<8x256xf32>
    %cst_45 = arith.constant 1.000000e+00 : f32
    %128 = vector.broadcast %cst_45 : f32 to vector<8x256xf32>
    %129 = arith.addf %128, %127 : vector<8x256xf32>
    %130 = arith.divf %128, %129 : vector<8x256xf32>
    %131 = arith.mulf %125, %130 : vector<8x256xf32>
    %c1_46 = arith.constant 1 : index
    %c0_47 = arith.constant 0 : index
    %c0_48 = arith.constant 0 : index
    %132 = vector.load %arg9[%c1_46, %c0_47, %c0_48] : memref<2x8x256xf32, #tpu.memory_space<vmem>>, vector<1x8x256xf32>
    %133 = vector.shape_cast %132 : vector<1x8x256xf32> to vector<8x256xf32>
    %134 = vector.shape_cast %131 : vector<8x256xf32> to vector<1x8x256xf32>
    tpu.vector_store %arg9[%c1_46, %c0_47, %c0_48], %134 {strides = array<i32>} : memref<2x8x256xf32, #tpu.memory_space<vmem>>, vector<1x8x256xf32>,
    return
  }
  func.func @transform_0(%arg0: i32) -> (i32, i32, i32) {
    %c0_i32 = arith.constant 0 : i32
    %c0_i32_0 = arith.constant 0 : i32
    %c0_i32_1 = arith.constant 0 : i32
    return %arg0, %c0_i32, %c0_i32_0 : i32, i32, i32
  }
  func.func @transform_1(%arg0: i32) -> (i32, i32, i32) {
    %c0_i32 = arith.constant 0 : i32
    %c0_i32_0 = arith.constant 0 : i32
    %c0_i32_1 = arith.constant 0 : i32
    return %arg0, %c0_i32, %c0_i32_0 : i32, i32, i32
  }
  func.func @transform_2(%arg0: i32) -> (i32, i32) {
    %c0_i32 = arith.constant 0 : i32
    %c0_i32_0 = arith.constant 0 : i32
    %c0_i32_1 = arith.constant 0 : i32
    return %c0_i32, %c0_i32_0 : i32, i32
  }
  func.func @transform_3(%arg0: i32) -> (i32, i32) {
    %c0_i32 = arith.constant 0 : i32
    %c0_i32_0 = arith.constant 0 : i32
    %c0_i32_1 = arith.constant 0 : i32
    return %c0_i32, %c0_i32_0 : i32, i32
  }
  func.func @transform_4(%arg0: i32) -> (i32, i32) {
    %c0_i32 = arith.constant 0 : i32
    %c0_i32_0 = arith.constant 0 : i32
    %c0_i32_1 = arith.constant 0 : i32
    return %c0_i32, %c0_i32_0 : i32, i32
  }
  func.func @transform_5(%arg0: i32) -> (i32, i32) {
    %c0_i32 = arith.constant 0 : i32
    %c0_i32_0 = arith.constant 0 : i32
    %c0_i32_1 = arith.constant 0 : i32
    return %c0_i32, %c0_i32_0 : i32, i32
  }
  func.func @transform_6(%arg0: i32) -> (i32, i32) {
    %c0_i32 = arith.constant 0 : i32
    %c0_i32_0 = arith.constant 0 : i32
    %c0_i32_1 = arith.constant 0 : i32
    return %c0_i32, %c0_i32_0 : i32, i32
  }
  func.func @transform_7(%arg0: i32) -> (i32, i32) {
    %c0_i32 = arith.constant 0 : i32
    %c0_i32_0 = arith.constant 0 : i32
    %c0_i32_1 = arith.constant 0 : i32
    return %c0_i32, %c0_i32_0 : i32, i32
  }
  func.func @transform_8(%arg0: i32) -> (i32, i32, i32) {
    %c0_i32 = arith.constant 0 : i32
    %c0_i32_0 = arith.constant 0 : i32
    %c0_i32_1 = arith.constant 0 : i32
    return %arg0, %c0_i32, %c0_i32_0 : i32, i32, i32
  }
}

</mosaic_0001>

<bundles_post_ra>
// kernel: upsample_concat_conv.1
= control target key start
LH: loop header
LB: loop body
LE: loop exit
PB: predicated region body
PF: predicated region fallthrough
CT: control target
= control target key end

     0   :  { %v1177_v3 = vmov 0.0   ;;  %vm163_vm0 = vcmask 1045504   ;;  %vm82_vm1 = vcmask 523264   ;;  %vm159_vm2 = vcmask 48128   ;;  %s1181_s25 = smov 16   ;;  %s1182_s26 = smov 112   ;;  %s1566_s2 = inlined_call_operand.vmem [shape: f32[64,256], index: 2, kind: input, shape index: {}]   ;;  %s1567_s1 = inlined_call_operand.vmem [shape: f32[2,6,256], index: 1, kind: input, shape index: {}]   ;;  %s1568_s0 = inlined_call_operand.vmem [shape: f32[2,4,64], index: 0, kind: input, shape index: {}]   ;;  %s1569_s4 = inlined_call_operand.vmem [shape: f32[8,6], index: 4, kind: input, shape index: {}]   ;;  %s1570_s5 = inlined_call_operand.vmem [shape: f32[8,1], index: 5, kind: input, shape index: {}]   ;;  %s1571_s3 = inlined_call_operand.vmem [shape: f32[8,4], index: 3, kind: input, shape index: {}]   ;;  %s1572_s6 = inlined_call_operand.vmem [shape: f32[8,72], index: 6, kind: input, shape index: {}]   ;;  %s1573_s7 = inlined_call_operand.vmem [shape: f32[8,1], index: 7, kind: input, shape index: {}]   ;;  %s1574_s8 = inlined_call_operand.vmem [shape: f32[2,8,256], index: 8, kind: output, shape index: {}]  }
   0x1   :  { %v66_v0 = vld [vmem:[%s1566_s2 + $0x8] sm:$0xff]  ;;  %v68_v1 = vld [vmem:[%s1566_s2 + $0x18] sm:$0xff]  ;;  %v65_v2 = vld [vmem:[%s1566_s2] sm:$0xff]  ;;  %150 = vmatprep.mubr.f32.mxu0 %v1177_v3  ;;  %503 = vmatprep.mubr.f32.mxu1 %v1177_v3  ;;  %v1178_v29 = vmov 0   ;;  %vm245_vm3 = vcmask 1043456   ;;  %vm1579_vm4 = vcmask 31744   ;;  %v29_v50 = vlaneseq }
   0x2   :  { %v1240_v4 = vpack.c.bf16 %v68_v1, %v66_v0  ;;  %v67_v5 = vld [vmem:[%s1566_s2 + $0x10] sm:$0xff]  ;;  %v70_v6 = vld [vmem:[%s1566_s2 + $0x28] sm:$0xff]  ;;  %v72_v7 = vld [vmem:[%s1566_s2 + $0x38] sm:$0xff]  ;;  %1083 = vset.pattern.permute.xlu0 %v1178_v29  ;;  %1144 = vset.pattern.permute.xlu1 %v1178_v29  ;;  %vm1578_vm5 = vcmask 7168   ;;  %vm1577_vm7 = vcmask 1039360   ;;  %vm1575_vm11 = vcmask 130048  }
   0x3   :  { %v1251_v8 = vpack.c.bf16 %v67_v5, %v65_v2  ;;  %v1253_v9 = vpack.c.bf16 %v72_v7, %v70_v6  ;;  %v69_v10 = vld [vmem:[%s1566_s2 + $0x20] sm:$0xff]  ;;  %v71_v11 = vld [vmem:[%s1566_s2 + $0x30] sm:$0xff]  ;;  %v74_v12 = vld [vmem:[%s1566_s2 + $0x48] sm:$0xff]  ;;  %v30_v51 = vand.u32 127, %v29_v50  ;;  %vm1183_vm14 = vmmov 1  }
   0x4   :  { %997 = vmatprep.subr.bf16.mxu0 %v1240_v4  ;;  %v76_v13 = vld [vmem:[%s1566_s2 + $0x58] sm:$0xff]  ;;  %v1269_v14 = vpack.c.bf16 %v71_v11, %v69_v10  ;;  %v73_v16 = vld [vmem:[%s1566_s2 + $0x40] sm:$0xff]  ;;  %v75_v17 = vld [vmem:[%s1566_s2 + $0x50] sm:$0xff] }
   0x5   :  { %999 = vmatpush1.bf16.msra.mxu0 %v1251_v8  ;;  %v1272_v15 = vpack.c.bf16 %v76_v13, %v74_v12  ;;  %v78_v18 = vld [vmem:[%s1566_s2 + $0x68] sm:$0xff]  ;;  %v80_v19 = vld [vmem:[%s1566_s2 + $0x78] sm:$0xff]  ;;  %v1287_v20 = vpack.c.bf16 %v75_v17, %v73_v16  ;;  %v77_v22 = vld [vmem:[%s1566_s2 + $0x60] sm:$0xff]  ;;  %v31_v52 = vadd.s32 128, %v30_v51  ;;  %v36_v54 = vand.u32 15, %v30_v51 }
   0x6   :  { %1001 = vmatprep.subr.bf16.mxu0 %v1253_v9  ;;  %v1290_v21 = vpack.c.bf16 %v80_v19, %v78_v18  ;;  %v79_v23 = vld [vmem:[%s1566_s2 + $0x70] sm:$0xff]  ;;  %v158_v25 = vld [vmem:[%s1567_s1 + $0x8] sm:$0x3f]  ;;  %v81_v26 = vld [vmem:[%s1568_s0] sm:$0xf] }
   0x7   :  { %v1299_v24 = vpack.c.bf16 %v79_v23, %v77_v22  ;;  %v157_v27 = vld [vmem:[%s1567_s1] sm:$0x3f]  ;;  %v43_v55 = vand.u32 15, %v31_v52  ;;  %vm1353_vm6 = vcmp.ne.s32.totalorder %v36_v54, 0  ;;  %vm1366_vm10 = vcmp.ne.s32.totalorder %v36_v54, 15  ;;  %vm1388_vm12 = vmneg %vm1575_vm11 }
   0x8   :  { %v1319_v28 = vld [vmem:[%s1569_s4] sm:$0xff]  ;;  %vm1576_vm13 = vmpackc.low %vm1388_vm12, %vm1388_vm12 }
   0x9   :  { %1003 = vmatpush1.bf16.msra.mxu0 %v1269_v14  ;;  %v62_v30 = vld [vmem:[%s1570_s5] sm:$0xff]  ;;  %s1180_s5 = smov 1   ;;  %vm1357_vm8 = vcmp.ne.s32.totalorder %v43_v55, 0  ;;  %vm1362_vm9 = vcmp.ne.s32.totalorder %v43_v55, 15 }
   0xa   :  { %1005 = vmatprep.subr.bf16.mxu0 %v1272_v15  ;;  %325 = vperm.xlu0 %1083, %v62_v30   ;;  %v1330_v33 = vld [vmem:[%s1571_s3] sm:$0xff]  ;;  %s1179_s3 = smov 127   ;;  %vm1406_vm15 = vmpackc.low %vm1357_vm8, %vm1183_vm14 }
   0xb   :  { %v64_v61 = vld [vmem:[%s1573_s7] sm:$0xff] }
   0xd   :  { %1007 = vmatpush1.bf16.msra.mxu0 %v1287_v20 }
   0xe   :  { %1009 = vmatprep.subr.bf16.mxu0 %v1290_v21 }
  0x11   :  { %1011 = vmatpush1.bf16.msra.mxu0 %v1299_v24 }
  0x12   :  { %942 = vmatprep.subr.msk.mxu0 %vm163_vm0, %v158_v25 }
  0x14   :  { %941 = vmatmul.mubr.msk.f32.vlgmr.msra.gmra.mrb[0].mxu0 %vm82_vm1, %v81_v26 }
  0x15   :  { %943 = vmatpush1.msk.msra.mxu0 %vm163_vm0, %v157_v27  ;;  %234 = vmatprep.mubr.f32.mxu0 %v1177_v3 }
  0x18   :  { %944 = vmatmul.mubr.msk.f32.vlgmr.msra.gmra.mrb[2].mxu0 %vm159_vm2, %v1319_v28 }
  0x19   :  { %316 = vmatprep.mubr.f32.mxu0 %v1177_v3 }
  0x89   :  { %v1337_v34 = vpop.permute.xlu0 %325 }
  0xe7   :  { %v152_v31 = vpop.f32.mrb[0].mxu0 }
  0xe8   :  { %v154_v32 = vpop.f32.mrb[1].mxu0 }
  0xe9   :  { %945 = vmatprep.subr.msk.mxu0 %vm245_vm3, %v154_v32 }
  0xea   :  { %946 = vmatpush1.msk.msra.mxu0 %vm245_vm3, %v152_v31 }
  0xeb   :  { %947 = vmatmul.mubr.msk.f32.vlgmr.msra.gmra.mrb[2].mxu0 %vm1579_vm4, %v1330_v33 }
  0xec   :  { %913 = vmatprep.mubr.f32.mxu0 %v1177_v3 }
 0x1be   :  { %v318_v35 = vpop.f32.mrb[2].mxu0 }
 0x1bf   :  { %v328_v36 = vadd.f32 %v1337_v34, %v318_v35  ;;  %v320_v37 = vpop.f32.mrb[3].mxu0 }
 0x1c0   :  { %v329_v38 = vadd.f32 %v1337_v34, %v320_v37 }
 0x1c1   :  { %v948_v39 = vmul.f32 -1.442695, %v328_v36 }
 0x1c2   :  { %v949_v40 = vmul.f32 -1.442695, %v329_v38 }
 0x1c3   :  { %1145 = vpow2.f32 %v948_v39 }
 0x1c4   :  { %1147 = vpow2.f32 %v949_v40 }
 0x1cd   :  { %v1146_v41 = vpop.eup %1145 }
 0x1ce   :  { %v1148_v42 = vpop.eup %1147  ;;  %v336_v43 = vadd.f32 1.0, %v1146_v41 }
 0x1cf   :  { %v337_v44 = vadd.f32 1.0, %v1148_v42 }
 0x1d0   :  { %1149 = vrcp.f32 %v336_v43 }
 0x1d1   :  { %1151 = vrcp.f32 %v337_v44 }
 0x1da   :  { %v1150_v45 = vpop.eup %1149 }
 0x1db   :  { %v1152_v46 = vpop.eup %1151  ;;  %v1341_v47 = vmul.f32 %v1150_v45, %v328_v36 }
 0x1dc   :  { %v1343_v48 = vmul.f32 %v1152_v46, %v329_v38 }
 0x1dd   :  { %361 = vrot.lane.b32.xlu1 %v1341_v47, %s1179_s3 }
 0x1de   :  { %v1084_v49 = vpack.i.bf16 %v1343_v48, %v1341_v47 }
 0x1e0   :  { %1085 = vrot.lane.b32.xlu0 %v1084_v49, %s1180_s5 }
 0x1e1   :  { %363 = vrot.lane.b32.xlu1 %v1343_v48, %s1179_s3 }
 0x1e5   :  { %1090 = vrot.lane.b32.xlu1 %v1084_v49, %s1181_s25 }
 0x24f   :  { %v362_v53 = vpop.permute.xlu1 %361 }
 0x252   :  { %v1086_v56 = vpop.permute.xlu0 %1085 }
 0x253   :  { %v1088_v58 = vunpack.i.h.bf16 %v1086_v56  ;;  %v1087_v59 = vunpack.i.l.bf16 %v1086_v56  ;;  %v364_v60 = vpop.permute.xlu1 %363 }
 0x254   :  { %v366_v2 = vsel %vm1577_vm7, %v362_v53, %v364_v60  ;;  %v369_v5 = vsel %vm1577_vm7, %v364_v60, 0.0  ;;  %vm1434_vm7 = vmpackc.low %vm1366_vm10, %vm1183_vm14  ;;  %v966_v60 = vld [vmem:[%s1568_s0 + $0x4] sm:$0xf] }
 0x255   :  { %v354_v62 = vsel %vm1578_vm5, 0.0, %v1087_v59  ;;  %v351_v6 = vsel %vm1578_vm5, %v1087_v59, %v1088_v58  ;;  %v375_v11 = vsel %vm1362_vm9, %v369_v5, 0.0  ;;  %v374_v12 = vsel %vm1366_vm10, %v366_v2, 0.0  ;;  %v1455_v58 = vld [vmem:[%s1572_s6] sm:$0xff] }
 0x256   :  { %v359_v1 = vsel %vm1353_vm6, %v354_v62, 0.0  ;;  %v360_v7 = vsel %vm1357_vm8, %v351_v6, 0.0  ;;  %v1099_v13 = vpack.i.bf16 %v375_v11, %v374_v12  ;;  %v1023_v43 = vpack.c.bf16 %v369_v5, %v1343_v48 }
 0x257   :  { %v1104_v10 = vpack.i.bf16 %v360_v7, %v359_v1  ;;  %v1091_v16 = vpop.permute.xlu1 %1090  ;;  %vm409_vm5 = vcmask 916480   ;;  %v1026_v50 = vpack.c.bf16 %v366_v2, %v1341_v47 }
 0x258   :  { %v1093_v17 = vunpack.i.h.bf16 %v1091_v16  ;;  %v1092_v18 = vunpack.i.l.bf16 %v1091_v16  ;;  %vm1441_vm4 = vmpackc.low %vm409_vm5, %vm409_vm5 }
 0x259   :  { %1105 = vrot.lane.b32.xlu1 %v1104_v10, %s1182_s26  ;;  %1095 = vrot.lane.b32.xlu0 %v1104_v10, %s1181_s25 }
 0x25a   :  { %v391_v27 = vsel %vm1575_vm11, %v1092_v18, %v1093_v17 }
 0x25d   :  { %422 = vrot.lane.b32.xlu1 %v374_v12, %s1182_s26  ;;  %1100 = vrot.lane.b32.xlu0 %v1099_v13, %s1181_s25 }
 0x261   :  { %1110 = vrot.lane.b32.xlu0 %v1084_v49, %s1182_s26 }
 0x265   :  { %424 = vrot.lane.b32.xlu0 %v375_v11, %s1182_s26 }
 0x2cb   :  { %v1096_v19 = vpop.permute.xlu0 %1095  ;;  %v1106_v40 = vpop.permute.xlu1 %1105 }
 0x2cc   :  { %v1098_v22 = vunpack.i.h.bf16 %v1096_v19  ;;  %v1097_v23 = vunpack.i.l.bf16 %v1096_v19  ;;  %v1108_v46 = vunpack.i.h.bf16 %v1106_v40  ;;  %v1107_v49 = vunpack.i.l.bf16 %v1106_v40 }
 0x2ce   :  { %v383_v26 = vsel %vm1575_vm11, %v1097_v23, %v1098_v22  ;;  %v1014_v31 = vpack.c.bf16 %v1092_v18, %v1097_v23  ;;  %v410_v54 = vsel %vm409_vm5, %v1107_v49, %v1108_v46 }
 0x2cf   :  { %v1101_v29 = vpop.permute.xlu0 %1100  ;;  %v1012_v30 = vpack.c.bf16 %v391_v27, %v383_v26  ;;  %v423_v47 = vpop.permute.xlu1 %422 }
 0x2d0   :  { %v1103_v32 = vunpack.i.h.bf16 %v1101_v29  ;;  %v1102_v35 = vunpack.i.l.bf16 %v1101_v29 }
 0x2d1   :  { %1013 = vmatprep.subr.bf16.mxu1 %v1012_v30 }
 0x2d2   :  { %v401_v36 = vsel %vm1575_vm11, %v1102_v35, %v1103_v32  ;;  %1016 = vmatpush1.bf16.msk.msra.mxu1 %vm1576_vm13, %v1014_v31  ;;  %vm1021_vm11 = vmpackc.low %vm1353_vm6, %vm1388_vm12  ;;  %v1020_v41 = vpack.c.bf16 %v354_v62, %v1102_v35 }
 0x2d3   :  { %v1017_v38 = vpack.c.bf16 %v351_v6, %v401_v36  ;;  %v1111_v39 = vpop.permute.xlu0 %1110  ;;  %vm1417_vm13 = vmpackc.low %vm1362_vm9, %vm1183_vm14  ;;  %vm435_vm14 = vcmask 588800  }
 0x2d4   :  { %v1113_v44 = vunpack.i.h.bf16 %v1111_v39  ;;  %v1112_v45 = vunpack.i.l.bf16 %v1111_v39 }
 0x2d5   :  { %1019 = vmatprep.subr.msk.bf16.mxu1 %vm1406_vm15, %v1017_v38 }
 0x2d6   :  { %1022 = vmatpush1.bf16.msk.msra.mxu1 %vm1021_vm11, %v1020_v41  ;;  %v1029_v52 = vpack.c.bf16 %v1113_v44, %v1108_v46  ;;  %v418_v53 = vsel %vm409_vm5, %v1112_v45, %v1113_v44 }
 0x2d7   :  { %1025 = vmatprep.subr.msk.bf16.mxu1 %vm1417_vm13, %v1023_v43  ;;  %v1032_v55 = vpack.c.bf16 %v418_v53, %v410_v54  ;;  %v425_v56 = vpop.permute.xlu0 %424 }
 0x2d8   :  { %v426_v59 = vsel %vm409_vm5, %v423_v47, %v425_v56 }
 0x2da   :  { %1028 = vmatpush1.bf16.msk.msra.mxu1 %vm1434_vm7, %v1026_v50 }
 0x2db   :  { %1031 = vmatprep.subr.msk.bf16.mxu1 %vm1441_vm4, %v1029_v52 }
 0x2de   :  { %1033 = vmatpush1.bf16.msra.mxu1 %v1032_v55 }
 0x2df   :  { %962 = vmatprep.subr.msk.mxu1 %vm409_vm5, %v425_v56 }
 0x2e2   :  { %456 = vmatpush1.msra.mxu1 %v426_v59 }
 0x2e3   :  { %963 = vmatmul.mubr.msk.f32.vlgmr.msra.gmra.mrb[0].mxu1 %vm435_vm14, %v1455_v58  ;;  %1035 = vmatprep.subr.bf16.mxu1 %v1240_v4  ;;  %v969_v4 = vld [vmem:[%s1567_s1 + $0x18] sm:$0x3f] }
 0x2e4   :  { %1037 = vmatpush1.bf16.msra.mxu1 %v1251_v8  ;;  %595 = vmatprep.mubr.f32.mxu1 %v1177_v3  ;;  %v968_v8 = vld [vmem:[%s1567_s1 + $0x10] sm:$0x3f] }
 0x2e5   :  { %1039 = vmatprep.subr.bf16.mxu1 %v1253_v9 }
 0x2e8   :  { %1041 = vmatpush1.bf16.msra.mxu1 %v1269_v14 }
 0x2e9   :  { %1043 = vmatprep.subr.bf16.mxu1 %v1272_v15 }
 0x2ec   :  { %1045 = vmatpush1.bf16.msra.mxu1 %v1287_v20 }
 0x2ed   :  { %1047 = vmatprep.subr.bf16.mxu1 %v1290_v21 }
 0x2f0   :  { %1049 = vmatpush1.bf16.msra.mxu1 %v1299_v24 }
 0x2f1   :  { %970 = vmatprep.subr.msk.mxu1 %vm163_vm0, %v969_v4 }
 0x2f3   :  { %967 = vmatmul.mubr.msk.f32.vlgmr.msra.gmra.mrb[2].mxu1 %vm82_vm1, %v966_v60  ;;  %vm1598_vm1 = vcmask 31744  }
 0x2f4   :  { %675 = vmatprep.mubr.f32.mxu1 %v1177_v3  ;;  %971 = vmatpush1.msk.msra.mxu1 %vm163_vm0, %v968_v8  ;;  %vm1599_vm0 = vcmask 7168  }
 0x2f7   :  { %972 = vmatmul.mubr.msk.f32.vlgmr.msra.gmra.mrb[4].mxu1 %vm159_vm2, %v1319_v28  ;;  %vm1600_vm2 = vmmov %vm1599_vm0 }
 0x2f8   :  { %752 = vmatprep.mubr.f32.mxu1 %v1177_v3 }
 0x3b6   :  { %v1485_v9 = vpop.f32.mrb[0].mxu1 }
 0x3b7   :  { %v1487_v14 = vpop.f32.mrb[1].mxu1 }
 0x3c6   :  { %v597_v15 = vpop.f32.mrb[2].mxu1 }
 0x3c7   :  { %v599_v20 = vpop.f32.mrb[3].mxu1 }
 0x3c8   :  { %973 = vmatprep.subr.msk.mxu1 %vm245_vm3, %v599_v20 }
 0x3c9   :  { %974 = vmatpush1.msk.msra.mxu1 %vm245_vm3, %v597_v15  ;;  %vm1601_vm3 = vcmask 1039360  }
 0x3ca   :  { %975 = vmatmul.mubr.msk.f32.vlgmr.msra.gmra.mrb[4].mxu1 %vm1598_vm1, %v1330_v33  ;;  %vm1602_vm1 = vmmov %vm1601_vm3 }
 0x49d   :  { %v754_v21 = vpop.f32.mrb[4].mxu1 }
 0x49e   :  { %v759_v24 = vadd.f32 %v754_v21, %v1337_v34  ;;  %v756_v62 = vpop.f32.mrb[5].mxu1 }
 0x49f   :  { %v760_v28 = vadd.f32 %v756_v62, %v1337_v34 }
 0x4a0   :  { %v976_v3 = vmul.f32 -1.442695, %v759_v24 }
 0x4a1   :  { %v977_v1 = vmul.f32 -1.442695, %v760_v28 }
 0x4a2   :  { %1153 = vpow2.f32 %v976_v3 }
 0x4a3   :  { %1155 = vpow2.f32 %v977_v1 }
 0x4ac   :  { %v1154_v2 = vpop.eup %1153 }
 0x4ad   :  { %v1156_v5 = vpop.eup %1155  ;;  %v767_v6 = vadd.f32 1.0, %v1154_v2 }
 0x4ae   :  { %v768_v7 = vadd.f32 1.0, %v1156_v5 }
 0x4af   :  { %1157 = vrcp.f32 %v767_v6 }
 0x4b0   :  { %1159 = vrcp.f32 %v768_v7 }
 0x4b9   :  { %v1158_v10 = vpop.eup %1157 }
 0x4ba   :  { %v1160_v11 = vpop.eup %1159  ;;  %v1495_v12 = vmul.f32 %v1158_v10, %v759_v24 }
 0x4bb   :  { %v774_v33 = vmul.f32 %v1160_v11, %v760_v28 }
 0x4bc   :  { %787 = vrot.lane.b32.xlu0 %v1495_v12, %s1179_s3 }
 0x4bd   :  { %v1114_v34 = vpack.i.bf16 %v774_v33, %v1495_v12 }
 0x4bf   :  { %1115 = vrot.lane.b32.xlu1 %v1114_v34, %s1180_s5 }
 0x4c3   :  { %789 = vrot.lane.b32.xlu1 %v774_v33, %s1179_s3 }
 0x4c7   :  { %1120 = vrot.lane.b32.xlu1 %v1114_v34, %s1181_s25 }
 0x52e   :  { %v788_v22 = vpop.permute.xlu0 %787 }
 0x531   :  { %v1116_v13 = vpop.permute.xlu1 %1115 }
 0x532   :  { %v1118_v16 = vunpack.i.h.bf16 %v1116_v13  ;;  %v1117_v17 = vunpack.i.l.bf16 %v1116_v13 }
 0x534   :  { %v784_v18 = vsel %vm1599_vm0, 0.0, %v1117_v17  ;;  %v781_v19 = vsel %vm1600_vm2, %v1117_v17, %v1118_v16  ;;  %vm1606_vm0 = vmpackc.low %vm1388_vm12, %vm1388_vm12 }
 0x535   :  { %v785_v23 = vsel %vm1353_vm6, %v784_v18, 0.0  ;;  %v790_v26 = vpop.permute.xlu1 %789  ;;  %v786_v27 = vsel %vm1357_vm8, %v781_v19, 0.0  ;;  %vm1603_vm8 = vcmask 130048  }
 0x536   :  { %v791_v29 = vsel %vm1601_vm3, %v788_v22, %v790_v26  ;;  %v794_v30 = vsel %vm1602_vm1, %v790_v26, 0.0  ;;  %v1134_v31 = vpack.i.bf16 %v786_v27, %v785_v23 }
 0x537   :  { %v796_v32 = vsel %vm1362_vm9, %v794_v30, 0.0  ;;  %v795_v35 = vsel %vm1366_vm10, %v791_v29, 0.0  ;;  %vm1604_vm9 = vmmov %vm1603_vm8  ;;  %v1061_v59 = vpack.c.bf16 %v794_v30, %v774_v33  ;;  %v1064_v20 = vpack.c.bf16 %v791_v29, %v1495_v12 }
 0x538   :  { %1135 = vrot.lane.b32.xlu1 %v1134_v31, %s1182_s26  ;;  %1125 = vrot.lane.b32.xlu0 %v1134_v31, %s1181_s25  ;;  %v1129_v36 = vpack.i.bf16 %v796_v32, %v795_v35  ;;  %vm1605_vm10 = vmmov %vm1603_vm8 }
 0x539   :  { %v1121_v63 = vpop.permute.xlu1 %1120 }
 0x53a   :  { %v1123_v0 = vunpack.i.h.bf16 %v1121_v63  ;;  %v1122_v38 = vunpack.i.l.bf16 %v1121_v63 }
 0x53c   :  { %841 = vrot.lane.b32.xlu1 %v795_v35, %s1182_s26  ;;  %1130 = vrot.lane.b32.xlu0 %v1129_v36, %s1181_s25  ;;  %v811_v44 = vsel %vm1604_vm9, %v1122_v38, %v1123_v0 }
 0x540   :  { %432 = vperm.xlu1 %1144, %v64_v61   ;;  %1140 = vrot.lane.b32.xlu0 %v1114_v34, %s1182_s26 }
 0x544   :  { %843 = vrot.lane.b32.xlu0 %v796_v32, %s1182_s26 }
 0x5aa   :  { %v1126_v39 = vpop.permute.xlu0 %1125  ;;  %v1136_v56 = vpop.permute.xlu1 %1135 }
 0x5ab   :  { %v1128_v40 = vunpack.i.h.bf16 %v1126_v39  ;;  %v1127_v41 = vunpack.i.l.bf16 %v1126_v39  ;;  %v1138_v8 = vunpack.i.h.bf16 %v1136_v56  ;;  %v1137_v15 = vunpack.i.l.bf16 %v1136_v56 }
 0x5ad   :  { %v803_v43 = vsel %vm1603_vm8, %v1127_v41, %v1128_v40  ;;  %v1052_v49 = vpack.c.bf16 %v1122_v38, %v1127_v41  ;;  %v829_v37 = vsel %vm409_vm5, %v1137_v15, %v1138_v8 }
 0x5ae   :  { %v1131_v45 = vpop.permute.xlu0 %1130  ;;  %v1050_v46 = vpack.c.bf16 %v811_v44, %v803_v43  ;;  %v842_v57 = vpop.permute.xlu1 %841 }
 0x5af   :  { %v1133_v50 = vunpack.i.h.bf16 %v1131_v45  ;;  %v1132_v52 = vunpack.i.l.bf16 %v1131_v45 }
 0x5b0   :  { %1051 = vmatprep.subr.bf16.mxu0 %v1050_v46 }
 0x5b1   :  { %v821_v53 = vsel %vm1605_vm10, %v1132_v52, %v1133_v50  ;;  %1054 = vmatpush1.bf16.msk.msra.mxu0 %vm1606_vm0, %v1052_v49  ;;  %v1058_v47 = vpack.c.bf16 %v784_v18, %v1132_v52 }
 0x5b2   :  { %v1055_v54 = vpack.c.bf16 %v781_v19, %v821_v53  ;;  %v1141_v55 = vpop.permute.xlu0 %1140 }
 0x5b3   :  { %v1143_v60 = vunpack.i.h.bf16 %v1141_v55  ;;  %v1142_v4 = vunpack.i.l.bf16 %v1141_v55 }
 0x5b4   :  { %1057 = vmatprep.subr.msk.bf16.mxu0 %vm1406_vm15, %v1055_v54 }
 0x5b5   :  { %1060 = vmatpush1.bf16.msk.msra.mxu0 %vm1021_vm11, %v1058_v47  ;;  %v1067_v21 = vpack.c.bf16 %v1143_v60, %v1138_v8  ;;  %v837_v24 = vsel %vm409_vm5, %v1142_v4, %v1143_v60 }
 0x5b6   :  { %1063 = vmatprep.subr.msk.bf16.mxu0 %vm1417_vm13, %v1061_v59  ;;  %v1070_v25 = vpack.c.bf16 %v837_v24, %v829_v37  ;;  %v844_v62 = vpop.permute.xlu0 %843 }
 0x5b7   :  { %v845_v28 = vsel %vm409_vm5, %v842_v57, %v844_v62 }
 0x5b9   :  { %1066 = vmatpush1.bf16.msk.msra.mxu0 %vm1434_vm7, %v1064_v20 }
 0x5ba   :  { %1069 = vmatprep.subr.msk.bf16.mxu0 %vm1441_vm4, %v1067_v21 }
 0x5bd   :  { %1071 = vmatpush1.bf16.msra.mxu0 %v1070_v25 }
 0x5be   :  { %990 = vmatprep.subr.msk.mxu0 %vm409_vm5, %v844_v62 }
 0x5bf   :  { %v433_v42 = vpop.permute.xlu1 %432 }
 0x5c0   :  { %v506_v3 = vadd.f32 %v1485_v9, %v433_v42  ;;  %v508_v1 = vadd.f32 %v1487_v14, %v433_v42 }
 0x5c1   :  { %866 = vmatpush1.msra.mxu0 %v845_v28 }
 0x5c2   :  { %v964_v48 = vmul.f32 -1.442695, %v506_v3  ;;  %v965_v2 = vmul.f32 -1.442695, %v508_v1  ;;  %991 = vmatmul.mubr.msk.f32.vlgmr.msra.gmra.mrb[4].mxu0 %vm435_vm14, %v1455_v58 }
 0x5c4   :  { %1161 = vpow2.f32 %v964_v48 }
 0x5c5   :  { %1163 = vpow2.f32 %v965_v2 }
 0x5ce   :  { %v1162_v51 = vpop.eup %1161 }
 0x5cf   :  { %v1164_v5 = vpop.eup %1163  ;;  %v516_v6 = vadd.f32 1.0, %v1162_v51 }
 0x5d0   :  { %v517_v7 = vadd.f32 1.0, %v1164_v5 }
 0x5d1   :  { %1165 = vrcp.f32 %v516_v6 }
 0x5d2   :  { %1167 = vrcp.f32 %v517_v7 }
 0x5db   :  { %v1166_v10 = vpop.eup %1165 }
 0x5dc   :  { %v1168_v11 = vpop.eup %1167  ;;  %v522_v12 = vmul.f32 %v1166_v10, %v506_v3 }
 0x5dd   :  { %v523_v9 = vmul.f32 %v1168_v11, %v508_v1 }
 0x5de   :  { %524 = vst [vmem:[%s1574_s8] sm:$0xff] %v522_v12 }
 0x5df   :  { %525 = vst [vmem:[%s1574_s8 + $0x8] sm:$0xff] %v523_v9 }
 0x695   :  { %v915_v58 = vpop.f32.mrb[4].mxu0 }
 0x696   :  { %v916_v14 = vadd.f32 %v915_v58, %v433_v42  ;;  %v917_v33 = vpop.f32.mrb[5].mxu0 }
 0x697   :  { %v918_v34 = vadd.f32 %v917_v33, %v433_v42 }
 0x698   :  { %v992_v13 = vmul.f32 -1.442695, %v916_v14 }
 0x699   :  { %v993_v16 = vmul.f32 -1.442695, %v918_v34 }
 0x69a   :  { %1169 = vpow2.f32 %v992_v13 }
 0x69b   :  { %1171 = vpow2.f32 %v993_v16 }
 0x6a4   :  { %v1170_v17 = vpop.eup %1169 }
 0x6a5   :  { %v1172_v18 = vpop.eup %1171  ;;  %v926_v19 = vadd.f32 1.0, %v1170_v17 }
 0x6a6   :  { %v927_v22 = vadd.f32 1.0, %v1172_v18 }
 0x6a7   :  { %1173 = vrcp.f32 %v926_v19 }
 0x6a8   :  { %1175 = vrcp.f32 %v927_v22 }
 0x6b1   :  { %v1174_v23 = vpop.eup %1173 }
 0x6b2   :  { %v1176_v26 = vpop.eup %1175  ;;  %v932_v27 = vmul.f32 %v1174_v23, %v916_v14 }
 0x6b3   :  { %v933_v29 = vmul.f32 %v1176_v26, %v918_v34 }
 0x6b4   :  { %994 = vst [vmem:[%s1574_s8 + $0x10] sm:$0xff] %v932_v27 }
 0x6b5   :  { %995 = vst [vmem:[%s1574_s8 + $0x18] sm:$0xff] %v933_v29 }

</bundles_post_ra>
